<compile_context>
chip_gen: v7x
topology: tpu7x:2x2x1
jax: 0.10.0
libtpu: 0.0.40
codegen_flags: <defaults>
</compile_context>

<pallas_src>
import functools

import jax
import jax.numpy as jnp
from jax.experimental import pallas as pl
from jax.experimental.pallas import tpu as pltpu

_LANE = 128     # last-dim vreg width
_SUBLANE = 8    # second-to-last vreg width for f32


def _round_up(x, m):
    return (x + m - 1) // m * m


# ----------------------------------------------------------------------------
# Kernel body: the whole MLP for one batch tile; intermediate activations
# never touch HBM (they live in vregs / VMEM spill only).
# ----------------------------------------------------------------------------
def _fused_mlp_kernel(x_ref, *refs, num_layers, precision):
    o_ref = refs[-1]
    wb = refs[:-1]                                   # (w0, b0, ..., wL-1, bL-1)
    h = x_ref[...].astype(jnp.float32)               # (bm, D0_pad)
    for i in range(num_layers):
        w_ref = wb[2 * i]
        b_ref = wb[2 * i + 1]
        lhs = h.astype(w_ref.dtype)                  # bf16 fast path if weights are bf16
        h = jnp.dot(lhs, w_ref[...],
                    preferred_element_type=jnp.float32,
                    precision=precision)             # f32 accumulate
        h = h + b_ref[...].astype(jnp.float32)       # (1, D_pad) broadcast, f32 epilogue
        if i < num_layers - 1:
            h = jnp.maximum(h, 0.0)
    o_ref[...] = h.astype(o_ref.dtype)


# ----------------------------------------------------------------------------
# One-time parameter preparation (hoisted out of the per-call hot path).
# ----------------------------------------------------------------------------
def prepare_mlp_params(params, *, param_dtype=jnp.float32):
    """Zero-pad weights/biases to lane-dense shapes once; optionally store bf16.

    params: list of (W, b) with W of shape (D_in, D_out), b of shape (D_out,).
    Returns (dims, dims_pad, wb_pad) consumed by mlp_forward.
    """
    dims = [params[0][0].shape[0]] + [w.shape[1] for (w, _) in params]
    dims_pad = [_round_up(d, _LANE) for d in dims]
    wb_pad = []
    for i, (w, b) in enumerate(params):
        assert w.shape == (dims[i], dims[i + 1])
        wp = (jnp.zeros((dims_pad[i], dims_pad[i + 1]), param_dtype)
              .at[: dims[i], : dims[i + 1]].set(w.astype(param_dtype)))
        bp = (jnp.zeros((1, dims_pad[i + 1]), jnp.float32)      # bias stays f32
              .at[0, : dims[i + 1]].set(b.astype(jnp.float32)))
        wb_pad += [wp, bp]
    return tuple(dims), tuple(dims_pad), wb_pad


# ----------------------------------------------------------------------------
# Fused forward pass.
# ----------------------------------------------------------------------------
def mlp_forward(x, prepared, *, block_b=512, precision=None):
    dims, dims_pad, wb_pad = prepared
    B, D_in = x.shape
    assert D_in == dims[0]
    num_layers = len(dims) - 1

    # ---- VMEM budget (per-TensorCore) --------------------------------------
    try:
        vmem_cap = int(pltpu.get_tpu_info().vmem_capacity_bytes)
    except Exception:
        vmem_cap = 64 * 1024 * 1024          # conservative (v7x per-TC)
    budget_cap = int(vmem_cap * 0.85)        # headroom for compiler scratch

    # Resident weights are single-buffered (Buffered(1)) -> one copy each.
    weight_bytes = sum(int(a.size) * a.dtype.itemsize for a in wb_pad)
    # Per batch-row activation bytes: double-buffered x/out tiles + live f32 h
    # (current + next layer's operand), all f32.
    per_row = 4 * (2 * dims_pad[0] + 2 * dims_pad[-1] + 2 * max(dims_pad))

    # TODO(synk): if weight_bytes alone exceeds budget_cap (huge MLPs on v7x),
    # stream each layer's weights from HBM via pltpu.emit_pipeline instead of
    # keeping them VMEM-resident; the fused-activation structure stays the same.

    # ---- Batch tiling -------------------------------------------------------
    B8 = _round_up(B, _SUBLANE)
    bm = min(_round_up(block_b, _SUBLANE), B8)
    # Guarantee >= 2 batch tiles (when the batch allows) so the "parallel"
    # grid axis can shard across both TensorCores on megacore chips.
    if bm >= B8 and B8 >= 2 * _SUBLANE:
        bm = _round_up(pl.cdiv(B8, 2), _SUBLANE)
    # Shrink the tile until the resident-weights + activation footprint fits.
    while bm > _SUBLANE and weight_bytes + bm * per_row > budget_cap:
        bm = _round_up(bm // 2, _SUBLANE)
    B_pad = _round_up(B8, bm)
    grid = (B_pad // bm,)

    vmem_limit = min(budget_cap,
                     max(weight_bytes + bm * per_row + (4 << 20), 16 << 20))

    # ---- Pad activations only when needed ----------------------------------
    if B_pad != B or dims_pad[0] != D_in:
        x_in = jnp.zeros((B_pad, dims_pad[0]), x.dtype).at[:B, :D_in].set(x)
    else:
        x_in = x

    # ---- BlockSpecs ---------------------------------------------------------
    # x/out tiled over batch; weights & biases full, constant index_map (VMEM-
    # resident across batch tiles) and single-buffered.
    in_specs = [pl.BlockSpec((bm, dims_pad[0]), lambda i: (i, 0))]
    for li in range(num_layers):
        dpi, dpo = dims_pad[li], dims_pad[li + 1]
        in_specs.append(pl.BlockSpec((dpi, dpo), lambda i: (0, 0),
                                     pipeline_mode=pl.Buffered(1)))
        in_specs.append(pl.BlockSpec((1, dpo), lambda i: (0, 0),
                                     pipeline_mode=pl.Buffered(1)))
    out_spec = pl.BlockSpec((bm, dims_pad[-1]), lambda i: (i, 0))

    # ---- Advisory cost estimate ---------------------------------------------
    flops = sum(2 * B_pad * dims_pad[i] * dims_pad[i + 1]
                for i in range(num_layers))
    bytes_accessed = (x_in.size * x_in.dtype.itemsize
                      + weight_bytes
                      + B_pad * dims_pad[-1] * x.dtype.itemsize)
    cost = pl.CostEstimate(flops=flops, transcendentals=0,
                           bytes_accessed=bytes_accessed)

    kernel = functools.partial(_fused_mlp_kernel,
                               num_layers=num_layers, precision=precision)
    out_pad = pl.pallas_call(
        kernel,
        out_shape=jax.ShapeDtypeStruct((B_pad, dims_pad[-1]), x.dtype),
        grid_spec=pltpu.PrefetchScalarGridSpec(
            num_scalar_prefetch=0,
            grid=grid,
            in_specs=in_specs,
            out_specs=out_spec,
        ),
        compiler_params=pltpu.CompilerParams(
            dimension_semantics=("parallel",),     # batch tiles shard across TCs
            vmem_limit_bytes=int(vmem_limit),
        ),
        cost_estimate=cost,
    )(x_in, *wb_pad)

    if B_pad != B or dims_pad[-1] != dims[-1]:
        out_pad = out_pad[:B, : dims[-1]]
    return out_pad


def init_mlp_params(key, input_dim, hidden_dim, output_dim, num_layers):
    """Deterministic init matching nn.Linear's U(-1/sqrt(fan_in), 1/sqrt(fan_in))."""
    h = [hidden_dim] * (num_layers - 1)
    layer_dims = list(zip([input_dim] + h, h + [output_dim]))
    params = []
    for (n, k) in layer_dims:
        key, kw, kb = jax.random.split(key, 3)
        bound = 1.0 / jnp.sqrt(jnp.float32(n))
        # store weight as (D_in, D_out) so the kernel does x @ W
        w = jax.random.uniform(kw, (n, k), jnp.float32, -bound, bound)
        b = jax.random.uniform(kb, (k,), jnp.float32, -bound, bound)
        params.append((w, b))
    return params


if __name__ == "__main__":
    key = jax.random.PRNGKey(0)
    kx, kp = jax.random.split(key)

    # Small shapes consistent with the module's forward.
    batch, input_dim, hidden_dim, output_dim, num_layers = 64, 32, 64, 16, 3

    x = jax.random.normal(kx, (batch, input_dim), jnp.float32)
    params = init_mlp_params(kp, input_dim, hidden_dim, output_dim, num_layers)

    # Plain-JAX reference (same math as the PyTorch module).
    ref = x
    for i, (w, b) in enumerate(params):
        ref = ref @ w + b
        if i < num_layers - 1:
            ref = jnp.maximum(ref, 0.0)

    # f32 resident-weight path (default): matches nn.Linear f32 semantics.
    prep_f32 = prepare_mlp_params(params, param_dtype=jnp.float32)
    out = jax.block_until_ready(mlp_forward(x, prep_f32))
    assert out.shape == (batch, output_dim)
    assert jnp.allclose(out, ref, atol=1e-5, rtol=1e-5)

    # bf16 MXU fast path: weights stored bf16, f32 accumulate + f32 epilogue.
    prep_bf16 = prepare_mlp_params(params, param_dtype=jnp.bfloat16)
    out_bf16 = jax.block_until_ready(mlp_forward(x, prep_bf16))
    assert out_bf16.shape == (batch, output_dim)
    assert jnp.allclose(out_bf16, ref, atol=5e-2, rtol=5e-2)

    print("KERNEL_OK")
</pallas_src>

<mosaic_0001>
module attributes {stable_mosaic.version = 11 : i64} {
  func.func @_fused_mlp_kernel(%arg0: i32, %arg1: memref<32x128xf32, #tpu.memory_space<vmem>>, %arg2: memref<128x128xf32, #tpu.memory_space<vmem>>, %arg3: memref<1x128xf32, #tpu.memory_space<vmem>>, %arg4: memref<128x128xf32, #tpu.memory_space<vmem>>, %arg5: memref<1x128xf32, #tpu.memory_space<vmem>>, %arg6: memref<128x128xf32, #tpu.memory_space<vmem>>, %arg7: memref<1x128xf32, #tpu.memory_space<vmem>>, %arg8: memref<32x128xf32, #tpu.memory_space<vmem>>) attributes {dimension_semantics = [#tpu.dimension_semantics<parallel>], iteration_bounds = array<i64: 2>, scalar_prefetch = 0 : i64, scratch_operands = 0 : i64, tpu.core_type = #tpu.core_type<tc>, window_params = [{transform_indices = @transform_0, window_bounds = array<i64: 32, 128>}, {pipeline_mode = #tpu.pipeline_mode<synchronous>, transform_indices = @transform_1, window_bounds = array<i64: 128, 128>}, {pipeline_mode = #tpu.pipeline_mode<synchronous>, transform_indices = @transform_2, window_bounds = array<i64: 1, 128>}, {pipeline_mode = #tpu.pipeline_mode<synchronous>, transform_indices = @transform_3, window_bounds = array<i64: 128, 128>}, {pipeline_mode = #tpu.pipeline_mode<synchronous>, transform_indices = @transform_4, window_bounds = array<i64: 1, 128>}, {pipeline_mode = #tpu.pipeline_mode<synchronous>, transform_indices = @transform_5, window_bounds = array<i64: 128, 128>}, {pipeline_mode = #tpu.pipeline_mode<synchronous>, transform_indices = @transform_6, window_bounds = array<i64: 1, 128>}, {transform_indices = @transform_7, window_bounds = array<i64: 32, 128>}]} {
    %c0 = arith.constant 0 : index
    %c0_0 = arith.constant 0 : index
    %0 = vector.load %arg1[%c0, %c0_0] : memref<32x128xf32, #tpu.memory_space<vmem>>, vector<32x128xf32>
    %c0_1 = arith.constant 0 : index
    %c0_2 = arith.constant 0 : index
    %1 = vector.load %arg2[%c0_1, %c0_2] : memref<128x128xf32, #tpu.memory_space<vmem>>, vector<128x128xf32>
    %cst = arith.constant dense<0.000000e+00> : vector<32x128xf32>
    %2 = tpu.matmul %0, %1, %cst {dimension_numbers = #tpu.dot_dimension_numbers<[1], [0], [0], [1], [0, 0, 1, 1], [], []>} : vector<32x128xf32>, vector<128x128xf32>, vector<32x128xf32> -> vector<32x128xf32>
    %c0_3 = arith.constant 0 : index
    %c0_4 = arith.constant 0 : index
    %3 = vector.load %arg3[%c0_3, %c0_4] : memref<1x128xf32, #tpu.memory_space<vmem>>, vector<1x128xf32>
    %4 = vector.broadcast %3 : vector<1x128xf32> to vector<32x128xf32>
    %5 = arith.addf %2, %4 : vector<32x128xf32>
    %cst_5 = arith.constant 0.000000e+00 : f32
    %6 = vector.broadcast %cst_5 : f32 to vector<32x128xf32>
    %7 = arith.maximumf %5, %6 : vector<32x128xf32>
    %c0_6 = arith.constant 0 : index
    %c0_7 = arith.constant 0 : index
    %8 = vector.load %arg4[%c0_6, %c0_7] : memref<128x128xf32, #tpu.memory_space<vmem>>, vector<128x128xf32>
    %cst_8 = arith.constant dense<0.000000e+00> : vector<32x128xf32>
    %9 = tpu.matmul %7, %8, %cst_8 {dimension_numbers = #tpu.dot_dimension_numbers<[1], [0], [0], [1], [0, 0, 1, 1], [], []>} : vector<32x128xf32>, vector<128x128xf32>, vector<32x128xf32> -> vector<32x128xf32>
    %c0_9 = arith.constant 0 : index
    %c0_10 = arith.constant 0 : index
    %10 = vector.load %arg5[%c0_9, %c0_10] : memref<1x128xf32, #tpu.memory_space<vmem>>, vector<1x128xf32>
    %11 = vector.broadcast %10 : vector<1x128xf32> to vector<32x128xf32>
    %12 = arith.addf %9, %11 : vector<32x128xf32>
    %cst_11 = arith.constant 0.000000e+00 : f32
    %13 = vector.broadcast %cst_11 : f32 to vector<32x128xf32>
    %14 = arith.maximumf %12, %13 : vector<32x128xf32>
    %c0_12 = arith.constant 0 : index
    %c0_13 = arith.constant 0 : index
    %15 = vector.load %arg6[%c0_12, %c0_13] : memref<128x128xf32, #tpu.memory_space<vmem>>, vector<128x128xf32>
    %cst_14 = arith.constant dense<0.000000e+00> : vector<32x128xf32>
    %16 = tpu.matmul %14, %15, %cst_14 {dimension_numbers = #tpu.dot_dimension_numbers<[1], [0], [0], [1], [0, 0, 1, 1], [], []>} : vector<32x128xf32>, vector<128x128xf32>, vector<32x128xf32> -> vector<32x128xf32>
    %c0_15 = arith.constant 0 : index
    %c0_16 = arith.constant 0 : index
    %17 = vector.load %arg7[%c0_15, %c0_16] : memref<1x128xf32, #tpu.memory_space<vmem>>, vector<1x128xf32>
    %18 = vector.broadcast %17 : vector<1x128xf32> to vector<32x128xf32>
    %19 = arith.addf %16, %18 : vector<32x128xf32>
    %c0_17 = arith.constant 0 : index
    %c0_18 = arith.constant 0 : index
    %20 = vector.load %arg8[%c0_17, %c0_18] : memref<32x128xf32, #tpu.memory_space<vmem>>, vector<32x128xf32>
    tpu.vector_store %arg8[%c0_17, %c0_18], %19 {strides = array<i32>} : memref<32x128xf32, #tpu.memory_space<vmem>>, vector<32x128xf32>,
    return
  }
  func.func @transform_0(%arg0: i32) -> (i32, i32) {
    %c0_i32 = arith.constant 0 : i32
    %c0_i32_0 = arith.constant 0 : i32
    return %arg0, %c0_i32 : i32, i32
  }
  func.func @transform_1(%arg0: i32) -> (i32, i32) {
    %c0_i32 = arith.constant 0 : i32
    %c0_i32_0 = arith.constant 0 : i32
    %c0_i32_1 = arith.constant 0 : i32
    return %c0_i32, %c0_i32_0 : i32, i32
  }
  func.func @transform_2(%arg0: i32) -> (i32, i32) {
    %c0_i32 = arith.constant 0 : i32
    %c0_i32_0 = arith.constant 0 : i32
    %c0_i32_1 = arith.constant 0 : i32
    return %c0_i32, %c0_i32_0 : i32, i32
  }
  func.func @transform_3(%arg0: i32) -> (i32, i32) {
    %c0_i32 = arith.constant 0 : i32
    %c0_i32_0 = arith.constant 0 : i32
    %c0_i32_1 = arith.constant 0 : i32
    return %c0_i32, %c0_i32_0 : i32, i32
  }
  func.func @transform_4(%arg0: i32) -> (i32, i32) {
    %c0_i32 = arith.constant 0 : i32
    %c0_i32_0 = arith.constant 0 : i32
    %c0_i32_1 = arith.constant 0 : i32
    return %c0_i32, %c0_i32_0 : i32, i32
  }
  func.func @transform_5(%arg0: i32) -> (i32, i32) {
    %c0_i32 = arith.constant 0 : i32
    %c0_i32_0 = arith.constant 0 : i32
    %c0_i32_1 = arith.constant 0 : i32
    return %c0_i32, %c0_i32_0 : i32, i32
  }
  func.func @transform_6(%arg0: i32) -> (i32, i32) {
    %c0_i32 = arith.constant 0 : i32
    %c0_i32_0 = arith.constant 0 : i32
    %c0_i32_1 = arith.constant 0 : i32
    return %c0_i32, %c0_i32_0 : i32, i32
  }
  func.func @transform_7(%arg0: i32) -> (i32, i32) {
    %c0_i32 = arith.constant 0 : i32
    %c0_i32_0 = arith.constant 0 : i32
    return %arg0, %c0_i32 : i32, i32
  }
}

</mosaic_0001>

<bundles_post_ra>
// kernel: tpu_custom_call.1
= control target key start
LH: loop header
LB: loop body
LE: loop exit
PB: predicated region body
PF: predicated region fallthrough
CT: control target
= control target key end

     0   :  { %12 = vsyncpa [#allocation3], 0  ;;  %s1720_s0 = inlined_call_operand.hbm [shape: f32[64,128], index: 0, kind: input, shape index: {}]   ;;  %s1721_s1 = inlined_call_operand.hbm [shape: f32[128,128], index: 1, kind: input, shape index: {}]   ;;  %s1722_s2 = inlined_call_operand.vmem [shape: f32[1,128], index: 2, kind: input, shape index: {}]   ;;  %s1723_s3 = inlined_call_operand.hbm [shape: f32[128,128], index: 3, kind: input, shape index: {}]   ;;  %s1724_s4 = inlined_call_operand.vmem [shape: f32[1,128], index: 4, kind: input, shape index: {}]   ;;  %s1725_s5 = inlined_call_operand.hbm [shape: f32[128,128], index: 5, kind: input, shape index: {}]   ;;  %s1726_s6 = inlined_call_operand.vmem [shape: f32[1,128], index: 6, kind: input, shape index: {}]   ;;  %s1727_s7 = inlined_call_operand.hbm [shape: f32[64,128], index: 7, kind: output, shape index: {}]  }
   0x1   :  { %14 = vsyncpa [#allocation3 + $0x1], 0 }
   0x2   :  { %15 = vsyncpa [#allocation6], 0 }
   0x3   :  { %16 = vsyncpa [#allocation9], 0 }
   0x4   :  { %17 = vsyncpa [#allocation4], 0 }
   0x5   :  { %19 = vsyncpa [#allocation4 + $0x1], 0  ;;  %s1430_s24 = smov 0   ;;  %s1432_s25 = smov 0  }
   0x6   :  { %s1434_s26 = smov 0   ;;  %s1436_s27 = smov 0  }
   0x7 LB: > { %s1451_s28 = sadd.s32 4294967295, %s1379_s27   ;;  %s799_s29 = sadd.s32 4294967294, %s1379_s27   ;;  %s1379_s27 = sphi %s1436_s27, %s1753_s27   ;;  %s1375_s26 = sphi %s1434_s26, %s1752_s26   ;;  %s1371_s25 = sphi %s1432_s25, %s1751_s25   ;;  %s1367_s24 = sphi %s1430_s24, %s1750_s24  }
   0x8   : > { %p45_p0 = scmp.ne.s32.totalorder %s1371_s25, %s1367_s24  ;;  %p1728_p1 = scmp.eq.s32.totalorder %s1451_s28, 0 }
   0x9   : > { %p201_p3 = scmp.eq.s32.totalorder %s799_s29, 1  ;;  %p800_p5 = scmp.ge.s32.totalorder %s1379_s27, 1 }
   0xa   : > { %p1460_p4 = por %p1728_p1, %p45_p0  ;;  %p208_p7 = scmp.lt.s32.totalorder %s1379_s27, 3 }
   0xb   : > { %p1465_p6 = por %p201_p3, %p45_p0  ;;  %s1381_s10 = smov [#allocation5]  }
   0xc   : > { %s1732_s30 = scalar_select %p1460_p4, 1, 0 }
   0xd   : > { %s1733_s8 = scalar_select %p1465_p6, 1, 0 }
   0xe   : > { %p1470_p8 = pnand %p800_p5, %p208_p7  ;;  %s220_s11 = sshll.u32 %s1381_s10, 4  ;;  %s1474_s11 = int_to_ptr.vmem [resolvable:$true] %s220_s11 }
   0xf   : > { %1734 = sst [smem:[#allocation15_spill]] %s1733_s8  ;;  %s1382_s13 = smov [#allocation7]  }
  0x10   : > { %s1735_s9 = scalar_select %p1470_p8, 1, 0 }
  0x11   : > { %p1126_p9 = pneg %p1470_p8  ;;  %s236_s14 = sshll.u32 %s1382_s13, 4  ;;  %s1485_s14 = int_to_ptr.vmem [resolvable:$true] %s236_s14 }
  0x12   : > { %s1383_s15 = smov [#allocation8]   ;;  %s1191_s19 = scalar_lea.hbm %s1721_s1, 2048 }
  0x13   : > { %p1481_p11 = pnand %p1126_p9, %p1728_p1  ;;  %s1487_s16 = sshll.u32 %s1383_s15, 4  ;;  %s253_s16 = int_to_ptr.vmem [resolvable:$true] %s1487_s16 }
  0x14   : > { %p1192_p12 = scmp.ne.s32.totalorder %s1721_s1, %s1191_s19  ;;  %p1198_p5 = scmp.lt.u32.totalorder %s1191_s19, %s1721_s1 }
  0x15   : > { %p1497_p13 = pneg %p1481_p11 }
  0x17   : > { %p1194_p0 = pnand %p1497_p13, %p1192_p12 }
  0x19   : > { %p1195_p3 = pneg %p1194_p0 }
  0x1b   : > { %p1200_p7 = pnand %p1198_p5, %p1195_p3 }
  0x1d   : > { %1203 = shalt.err (!%p1200_p7)
}
  0x1e   : > { %s1204_s10 = scalar_lea.vmem %s1474_s11, 2048  ;;  %p1212_p2 = scmp.lt.s32.totalorder %s1474_s11, %s1474_s11 }
  0x1f   : > { %p1205_p9 = scmp.ne.s32.totalorder %s1474_s11, %s1204_s10  ;;  %p1213_p6 = scmp.lt.s32.totalorder %s1204_s10, %s1204_s10 }
  0x21   : > { %p1207_p10 = pnand %p1205_p9, %p1497_p13  ;;  %p1214_p12 = por %p1213_p6, %p1212_p2 }
  0x23   : > { %p1208_p1 = pneg %p1207_p10 }
  0x25   : > { %p1215_p0 = pnand %p1214_p12, %p1208_p1 }
  0x27   : > { %1218 = shalt.err (!%p1215_p0)
}
  0x28   : > { %s1384_s13 = smov 128   ;;  %s1385_s15 = smov 8  }
  0x29   : > { %1129 = dma.hbm_to_vmem [thread:$0]  (!%p1481_p11), %s1721_s1, 2048, %s1474_s11, [#allocation6], %s1384_s13, %s1384_s13, %s1385_s15  }
  0x2a   : > { %s1219_s21 = scalar_lea.hbm %s1723_s3, 2048 }
  0x2b   : > { %p1220_p1 = scmp.ne.s32.totalorder %s1723_s3, %s1219_s21  ;;  %p1226_p10 = scmp.lt.u32.totalorder %s1219_s21, %s1723_s3 }
  0x2d   : > { %p1222_p2 = pnand %p1220_p1, %p1497_p13 }
  0x2f   : > { %p1223_p6 = pneg %p1222_p2 }
  0x31   : > { %p1228_p3 = pnand %p1226_p10, %p1223_p6 }
  0x33   : > { %1231 = shalt.err (!%p1228_p3)
}
  0x34   : > { %s1232_s11 = scalar_lea.vmem %s1485_s14, 2048  ;;  %p1240_p12 = scmp.lt.s32.totalorder %s1485_s14, %s1485_s14 }
  0x35   : > { %p1233_p5 = scmp.ne.s32.totalorder %s1485_s14, %s1232_s11  ;;  %p1241_p0 = scmp.lt.s32.totalorder %s1232_s11, %s1232_s11 }
  0x37   : > { %p1235_p7 = pnand %p1233_p5, %p1497_p13  ;;  %p1242_p1 = por %p1241_p0, %p1240_p12 }
  0x39   : > { %p1236_p9 = pneg %p1235_p7 }
  0x3b   : > { %p1243_p2 = pnand %p1242_p1, %p1236_p9 }
  0x3d   : > { %1246 = shalt.err (!%p1243_p2)
}
  0x3e   : > { %1132 = dma.hbm_to_vmem [thread:$0]  (!%p1481_p11), %s1723_s3, 2048, %s1485_s14, [#allocation6], %s1384_s13, %s1384_s13, %s1385_s15  }
  0x3f   : > { %s1247_s20 = scalar_lea.hbm %s1725_s5, 2048 }
  0x40   : > { %p1248_p6 = scmp.ne.s32.totalorder %s1725_s5, %s1247_s20  ;;  %p1254_p5 = scmp.lt.u32.totalorder %s1247_s20, %s1725_s5 }
  0x42   : > { %p1250_p10 = pnand %p1248_p6, %p1497_p13 }
  0x44   : > { %p1251_p3 = pneg %p1250_p10 }
  0x46   : > { %p1256_p7 = pnand %p1254_p5, %p1251_p3 }
  0x48   : > { %1259 = shalt.err (!%p1256_p7)
}
  0x49   : > { %s1260_s11 = scalar_lea.vmem %s253_s16, 2048  ;;  %p1268_p1 = scmp.lt.s32.totalorder %s253_s16, %s253_s16 }
  0x4a   : > { %p1261_p9 = scmp.ne.s32.totalorder %s253_s16, %s1260_s11  ;;  %p1269_p2 = scmp.lt.s32.totalorder %s1260_s11, %s1260_s11 }
  0x4c   : > { %p1263_p12 = pnand %p1261_p9, %p1497_p13  ;;  %p1270_p4 = por %p1269_p2, %p1268_p1 }
  0x4e   : > { %p1264_p0 = pneg %p1263_p12 }
  0x50   : > { %p1271_p8 = pnand %p1270_p4, %p1264_p0 }
  0x52   : > { %1274 = shalt.err (!%p1271_p8)
}
  0x53   : > { %1135 = dma.hbm_to_vmem [thread:$0]  (!%p1481_p11), %s1725_s5, 2048, %s253_s16, [#allocation9], %s1384_s13, %s1384_s13, %s1385_s15  }
  0x54   : > { %s1570_s22 = sadd.s32 1, %s1379_s27   ;;  %s32_s17 = sadd.s32 1, %s1375_s26 }
  0x55   : > { %s29_s12 = ssub.s32 %s1379_s27, %s1570_s22  ;;  %p39_p8 = scmp.ne.s32.totalorder %s1375_s26, %s1371_s25 }
  0x56   : > { %p30_p4 = scmp.eq.s32.totalorder %s29_s12, 0  ;;  %p40_p13 = scmp.eq.s32.totalorder %s1379_s27, 0 }
  0x57   : > { %p1147_p6 = scmp.lt.s32.totalorder %s1379_s27, 2  ;;  %p1738_p3 = scmp.eq.s32.totalorder %s1451_s28, 1 }
  0x58   : > { %s1580_s18 = scalar_select %p30_p4, %s1375_s26, %s32_s17  }
  0x59   : > { %p41_p10 = por %p40_p13, %p39_p8  ;;  %p1584_p5 = por %p1738_p3, %p39_p8 }
  0x5a   : > { %s269_s20 = sand.u32 1, %s1375_s26   ;;  %s822_s21 = sshll.u32 %s1379_s27, 9 }
  0x5b   : > { %s805_s16 = sshll.u32 %s269_s20, 5  ;;  %s1593_s10 = scalar_lea.hbm %s1720_s0, %s822_s21 }
  0x5c   : > { %s273_s11 = scalar_lea.vmem [#allocation2], %s805_s16  ;;  %p1595_p11 = pnand %p1147_p6, %p41_p10 }
  0x5d   : > { %s280_s14 = sshll.u32 %s273_s11, 4  ;;  %s1601_s12 = scalar_lea.sflag [#allocation3], %s269_s20  ;;  %s1599_s14 = int_to_ptr.vmem [resolvable:$true] %s280_s14 }
  0x5e   : > { %s1275_s17 = scalar_lea.hbm %s1593_s10, 512  ;;  %p1277_p9 = pneg %p1595_p11 }
  0x5f   : > { %p1276_p7 = scmp.ne.s32.totalorder %s1593_s10, %s1275_s17  ;;  %s1280_s23 = scalar_lea.hbm %s1720_s0, 1024 }
  0x60   : > { %p1281_p1 = scmp.lt.u32.totalorder %s1593_s10, %s1720_s0  ;;  %p1282_p2 = scmp.lt.u32.totalorder %s1280_s23, %s1275_s17 }
  0x61   : > { %p1278_p12 = pnand %p1277_p9, %p1276_p7  ;;  %p1284_p8 = scmp.lt.u32.totalorder %s1275_s17, %s1593_s10 }
  0x62   : > { %p1283_p4 = por %p1282_p2, %p1281_p1 }
  0x63   : > { %p1279_p0 = pneg %p1278_p12 }
  0x64   : > { %p1285_p13 = por %p1284_p8, %p1283_p4 }
  0x66   : > { %p1286_p6 = pnand %p1285_p13, %p1279_p0 }
  0x68   : > { %1289 = shalt.err (!%p1286_p6)
}
  0x69   : > { %s1290_s20 = scalar_lea.vmem %s1599_s14, 512  ;;  %s1386_s21 = smov [#allocation2]  }
  0x6a   : > { %p1291_p10 = scmp.ne.s32.totalorder %s1599_s14, %s1290_s20  ;;  %s1295_s16 = sshll.u32 %s1386_s21, 4  ;;  %s1296_s16 = int_to_ptr.vmem [resolvable:$false] %s1295_s16 }
  0x6b   : > { %s1297_s29 = scalar_lea.vmem %s1296_s16, 1024  ;;  %p1298_p12 = scmp.lt.s32.totalorder %s1599_s14, %s1296_s16 }
  0x6c   : > { %p1293_p3 = pnand %p1291_p10, %p1277_p9  ;;  %p1299_p1 = scmp.lt.s32.totalorder %s1297_s29, %s1290_s20 }
  0x6e   : > { %p1294_p7 = pneg %p1293_p3  ;;  %p1300_p2 = por %p1299_p1, %p1298_p12 }
  0x70   : > { %p1301_p4 = pnand %p1300_p2, %p1294_p7 }
  0x72   : > { %1304 = shalt.err (!%p1301_p4)
}
  0x73   : > { %1139 = dma.hbm_to_vmem [thread:$0]  (!%p1595_p11), %s1593_s10, 512, %s1599_s14, %s1601_s12, %s1384_s13, %s1384_s13, %s1385_s15  }
  0x74   : > { %p1741_p9 = scmp.ne.s32.totalorder %s1735_s9, 0 }
  0x75   : > { %s1635_s17 = sand.u32 (!%p1741_p9), 1, %s1371_s25   ;;  %p1742_p0 = scmp.ne.s32.totalorder (!%p1741_p9), %s1732_s30, 0 }
  0x76   : > { %292 = sbr.rel (%p1741_p9) target bundleno = 838 (0x346), region = 48  ;;  %s809_s23 = sshll.u32 (!%p1741_p9), %s1635_s17, 5 }
  0x77   : > { %s295_s11 = scalar_lea.sflag (!%p1741_p9), [#allocation3], %s1635_s17  ;;  %s1641_s8 = scalar_lea.vmem (!%p1741_p9), [#allocation2], %s809_s23 }
  0x7d   : > { %1350 = dma.done.wait (%p1742_p0), %s295_s11, 512  }
  0x7e   : > { %1352 = vsyncadd (%p1742_p0), %s295_s11, 4294966784  ;;  %p1743_p11 = scmp.eq.s32.totalorder %s1451_s28, 0 }
  0x80   : > { %1354 = dma.done.wait (%p1743_p11), [#allocation6], 4096   ;;  %p1744_p8 = pmov %p1743_p11 }
  0x82   : > { %1356 = vsyncadd (%p1744_p8), [#allocation6], 4294963200  ;;  %p1745_p13 = pmov %p1744_p8 }
  0x83   : > { %p1746_p6 = pmov %p1744_p8 }
  0x84   : > { %1358 = dma.done.wait (%p1745_p13), [#allocation9], 2048  }
  0x85   : > { %1360 = vsyncadd (%p1746_p6), [#allocation9], 4294965248  ;;  %v347_v0 = vld [vmem:[#allocation5] sm:$0xff]  ;;  %v348_v1 = vld [vmem:[#allocation5 + $0x8] sm:$0xff]  ;;  %s340_s12 = scalar_lea.vmem [#allocation10], %s809_s23  ;;  %s823_s21 = sshll.u32 %s1451_s28, 9 }
  0x86   : > { %v349_v2 = vld [vmem:[#allocation5 + $0x10] sm:$0xff]  ;;  %v998_v3 = vpack.c.bf16 %v348_v1, %v347_v0  ;;  %v350_v4 = vld [vmem:[#allocation5 + $0x18] sm:$0xff]  ;;  %v351_v6 = vld [vmem:[#allocation5 + $0x20] sm:$0xff]  ;;  %s697_s20 = sshll.u32 %s340_s12, 4  ;;  %s1676_s11 = scalar_lea.hbm %s1727_s7, %s823_s21  ;;  %s1671_s20 = int_to_ptr.vmem [resolvable:$true] %s697_s20 }
  0x87   : > { %v1002_v5 = vpack.c.bf16 %v350_v4, %v349_v2  ;;  %v352_v7 = vld [vmem:[#allocation5 + $0x28] sm:$0xff]  ;;  %v343_v9 = vld [vmem:[%s1641_s8] sm:$0xff]  ;;  %v353_v10 = vld [vmem:[#allocation5 + $0x30] sm:$0xff]  ;;  %s684_s23 = scalar_lea.sflag [#allocation4], %s1635_s17  ;;  %s1305_s28 = scalar_lea.vmem %s1671_s20, 512 }
  0x88   : > { %999 = vmatprep.subr.bf16.mxu0 %v998_v3  ;;  %v1006_v8 = vpack.c.bf16 %v352_v7, %v351_v6  ;;  %v354_v11 = vld [vmem:[#allocation5 + $0x38] sm:$0xff]  ;;  %916 = vmatprep.mubr.f32.mxu0 %v343_v9  ;;  %v459_v12 = vld [vmem:[#allocation7] sm:$0xff]  ;;  %v460_v13 = vld [vmem:[#allocation7 + $0x8] sm:$0xff]  ;;  %p1306_p10 = scmp.ne.s32.totalorder %s1671_s20, %s1305_s28 }
  0x89   : > { %1001 = vmatpush3.bf16.msra.mxu0 %v998_v3  ;;  %v461_v14 = vld [vmem:[#allocation7 + $0x10] sm:$0xff]  ;;  %v462_v15 = vld [vmem:[#allocation7 + $0x18] sm:$0xff]  ;;  %v1030_v16 = vpack.c.bf16 %v460_v13, %v459_v12  ;;  %v1010_v18 = vpack.c.bf16 %v354_v11, %v353_v10  ;;  %v463_v19 = vld [vmem:[#allocation7 + $0x20] sm:$0xff] }
  0x8a   : > { %1003 = vmatprep.subr.bf16.mxu0 %v1002_v5  ;;  %v1034_v17 = vpack.c.bf16 %v462_v15, %v461_v14  ;;  %v464_v20 = vld [vmem:[#allocation7 + $0x28] sm:$0xff]  ;;  %v355_v21 = vld [vmem:[#allocation5 + $0x40] sm:$0xff]  ;;  %v465_v25 = vld [vmem:[#allocation7 + $0x30] sm:$0xff]  ;;  %p1307_p3 = pnand %p1306_p10, %p1584_p5 }
  0x8b   : > { %v356_v22 = vld [vmem:[#allocation5 + $0x48] sm:$0xff]  ;;  %1031 = vmatprep.subr.bf16.mxu1 %v1030_v16  ;;  %v1038_v23 = vpack.c.bf16 %v464_v20, %v463_v19  ;;  %v466_v26 = vld [vmem:[#allocation7 + $0x38] sm:$0xff]  ;;  %v357_v27 = vld [vmem:[#allocation5 + $0x50] sm:$0xff] }
  0x8c   : > { %1033 = vmatpush3.bf16.msra.mxu1 %v1030_v16  ;;  %v1014_v24 = vpack.c.bf16 %v356_v22, %v355_v21  ;;  %v358_v28 = vld [vmem:[#allocation5 + $0x58] sm:$0xff]  ;;  %v1042_v29 = vpack.c.bf16 %v466_v26, %v465_v25  ;;  %v467_v31 = vld [vmem:[#allocation7 + $0x40] sm:$0xff]  ;;  %v468_v32 = vld [vmem:[#allocation7 + $0x48] sm:$0xff]  ;;  %p1308_p7 = pneg %p1307_p3 }
  0x8d   : > { %1005 = vmatpush3.bf16.msra.mxu0 %v1002_v5  ;;  %1035 = vmatprep.subr.bf16.mxu1 %v1034_v17  ;;  %v1018_v30 = vpack.c.bf16 %v358_v28, %v357_v27  ;;  %v359_v33 = vld [vmem:[#allocation5 + $0x60] sm:$0xff]  ;;  %v360_v34 = vld [vmem:[#allocation5 + $0x68] sm:$0xff]  ;;  %v1046_v35 = vpack.c.bf16 %v468_v32, %v467_v31  ;;  %v469_v37 = vld [vmem:[#allocation7 + $0x50] sm:$0xff] }
  0x8e   : > { %1007 = vmatprep.subr.bf16.mxu0 %v1006_v8  ;;  %v1022_v36 = vpack.c.bf16 %v360_v34, %v359_v33  ;;  %v470_v38 = vld [vmem:[#allocation7 + $0x58] sm:$0xff]  ;;  %v361_v39 = vld [vmem:[#allocation5 + $0x70] sm:$0xff]  ;;  %v471_v43 = vld [vmem:[#allocation7 + $0x60] sm:$0xff] }
  0x8f   : > { %v362_v40 = vld [vmem:[#allocation5 + $0x78] sm:$0xff]  ;;  %v1050_v41 = vpack.c.bf16 %v470_v38, %v469_v37  ;;  %v472_v44 = vld [vmem:[#allocation7 + $0x68] sm:$0xff]  ;;  %v345_v47 = vld [vmem:[%s1641_s8 + $0x10] sm:$0xff] }
  0x90   : > { %1037 = vmatpush3.bf16.msra.mxu1 %v1034_v17  ;;  %v1026_v42 = vpack.c.bf16 %v362_v40, %v361_v39  ;;  %v1054_v45 = vpack.c.bf16 %v472_v44, %v471_v43  ;;  %v344_v46 = vld [vmem:[%s1641_s8 + $0x8] sm:$0xff]  ;;  %v346_v48 = vld [vmem:[%s1641_s8 + $0x18] sm:$0xff]  ;;  %v473_v49 = vld [vmem:[#allocation7 + $0x70] sm:$0xff]  ;;  %s1387_s8 = smov [#allocation10]  }
  0x91   : > { %1009 = vmatpush3.bf16.msra.mxu0 %v1006_v8  ;;  %1039 = vmatprep.subr.bf16.mxu1 %v1038_v23  ;;  %v474_v50 = vld [vmem:[#allocation7 + $0x78] sm:$0xff]  ;;  %v571_v52 = vld [vmem:[#allocation8] sm:$0xff]  ;;  %v572_v53 = vld [vmem:[#allocation8 + $0x8] sm:$0xff]  ;;  %s1309_s30 = sshll.u32 %s1387_s8, 4  ;;  %s1310_s30 = int_to_ptr.vmem [resolvable:$false] %s1309_s30 }
  0x92   : > { %1011 = vmatprep.subr.bf16.mxu0 %v1010_v18  ;;  %v1058_v51 = vpack.c.bf16 %v474_v50, %v473_v49  ;;  %v573_v54 = vld [vmem:[#allocation8 + $0x10] sm:$0xff]  ;;  %v1062_v55 = vpack.c.bf16 %v572_v53, %v571_v52  ;;  %v574_v56 = vld [vmem:[#allocation8 + $0x18] sm:$0xff]  ;;  %v575_v58 = vld [vmem:[#allocation8 + $0x20] sm:$0xff]  ;;  %s1311_s9 = scalar_lea.vmem %s1310_s30, 1024  ;;  %p1312_p12 = scmp.lt.s32.totalorder %s1671_s20, %s1310_s30 }
  0x93   : > { %v1066_v57 = vpack.c.bf16 %v574_v56, %v573_v54  ;;  %v576_v59 = vld [vmem:[#allocation8 + $0x28] sm:$0xff]  ;;  %v577_v61 = vld [vmem:[#allocation8 + $0x30] sm:$0xff]  ;;  %v578_v62 = vld [vmem:[#allocation8 + $0x38] sm:$0xff]  ;;  %p1313_p1 = scmp.lt.s32.totalorder %s1311_s9, %s1305_s28 }
  0x94   : > { %1041 = vmatpush3.bf16.msra.mxu1 %v1038_v23  ;;  %v1070_v60 = vpack.c.bf16 %v576_v59, %v575_v58  ;;  %v1074_v63 = vpack.c.bf16 %v578_v62, %v577_v61  ;;  %v579_v0 = vld [vmem:[#allocation8 + $0x40] sm:$0xff]  ;;  %v580_v1 = vld [vmem:[#allocation8 + $0x48] sm:$0xff]  ;;  %v581_v3 = vld [vmem:[#allocation8 + $0x50] sm:$0xff] }
  0x95   : > { %1013 = vmatpush3.bf16.msra.mxu0 %v1010_v18  ;;  %1043 = vmatprep.subr.bf16.mxu1 %v1042_v29  ;;  %v1078_v2 = vpack.c.bf16 %v580_v1, %v579_v0  ;;  %v582_v4 = vld [vmem:[#allocation8 + $0x58] sm:$0xff]  ;;  %v583_v6 = vld [vmem:[#allocation8 + $0x60] sm:$0xff]  ;;  %v584_v7 = vld [vmem:[#allocation8 + $0x68] sm:$0xff]  ;;  %p1314_p2 = por %p1313_p1, %p1312_p12 }
  0x96   : > { %1015 = vmatprep.subr.bf16.mxu0 %v1014_v24  ;;  %v1082_v5 = vpack.c.bf16 %v582_v4, %v581_v3  ;;  %v1086_v8 = vpack.c.bf16 %v584_v7, %v583_v6  ;;  %v814_v9 = vld [vmem:[%s1722_s2] ss:$0 sm:$0xff]  ;;  %v585_v22 = vld [vmem:[#allocation8 + $0x70] sm:$0xff]  ;;  %v586_v23 = vld [vmem:[#allocation8 + $0x78] sm:$0xff] }
  0x97   : > { %v815_v25 = vld [vmem:[%s1724_s4] ss:$0 sm:$0xff]  ;;  %p1315_p4 = pnand %p1314_p2, %p1308_p7 }
  0x98   : > { %1045 = vmatpush3.bf16.msra.mxu1 %v1042_v29  ;;  %v816_v38 = vld [vmem:[%s1726_s6] ss:$0 sm:$0xff] }
  0x99   : > { %1017 = vmatpush3.bf16.msra.mxu0 %v1014_v24  ;;  %1047 = vmatprep.subr.bf16.mxu1 %v1046_v35  ;;  %v1090_v24 = vpack.c.bf16 %v586_v23, %v585_v22 }
  0x9a   : > { %1019 = vmatprep.subr.bf16.mxu0 %v1018_v30 }
  0x9c   : > { %1049 = vmatpush3.bf16.msra.mxu1 %v1046_v35 }
  0x9d   : > { %1021 = vmatpush3.bf16.msra.mxu0 %v1018_v30  ;;  %1051 = vmatprep.subr.bf16.mxu1 %v1050_v41 }
  0x9e   : > { %1023 = vmatprep.subr.bf16.mxu0 %v1022_v36 }
  0xa0   : > { %1053 = vmatpush3.bf16.msra.mxu1 %v1050_v41 }
  0xa1   : > { %1025 = vmatpush3.bf16.msra.mxu0 %v1022_v36  ;;  %1055 = vmatprep.subr.bf16.mxu1 %v1054_v45 }
  0xa2   : > { %1027 = vmatprep.subr.bf16.mxu0 %v1026_v42 }
  0xa4   : > { %1057 = vmatpush3.bf16.msra.mxu1 %v1054_v45 }
  0xa5   : > { %1029 = vmatpush3.bf16.msra.mxu0 %v1026_v42  ;;  %1059 = vmatprep.subr.bf16.mxu1 %v1058_v51 }
  0xa6   : > { %1063 = vmatprep.subr.bf16.mxu0 %v1062_v55 }
  0xa8   : > { %917 = vmatmul.mubr.f32.vlgmr.msra.gmra.mrb[0].mxu0 %v344_v46  ;;  %1061 = vmatpush3.bf16.msra.mxu1 %v1058_v51 }
  0xa9   : > { %919 = vmatprep.mubr.f32.mxu0 %v345_v47  ;;  %1094 = vmatprep.subr.bf16.mxu1 %v1062_v55 }
  0xaa   : > { %1065 = vmatpush3.bf16.msra.mxu0 %v1062_v55 }
  0xab   : > { %1067 = vmatprep.subr.bf16.mxu0 %v1066_v57 }
  0xac   : > { %920 = vmatmul.mubr.f32.gmra.mrb[2].mxu0 %v346_v48 }
  0xae   : > { %1069 = vmatpush3.bf16.msra.mxu0 %v1066_v57 }
  0xaf   : > { %1071 = vmatprep.subr.bf16.mxu0 %v1070_v60 }
  0xb2   : > { %1073 = vmatpush3.bf16.msra.mxu0 %v1070_v60 }
  0xb3   : > { %1075 = vmatprep.subr.bf16.mxu0 %v1074_v63 }
  0xb6   : > { %1077 = vmatpush3.bf16.msra.mxu0 %v1074_v63 }
  0xb7   : > { %1079 = vmatprep.subr.bf16.mxu0 %v1078_v2 }
  0xba   : > { %1081 = vmatpush3.bf16.msra.mxu0 %v1078_v2 }
  0xbb   : > { %1083 = vmatprep.subr.bf16.mxu0 %v1082_v5 }
  0xbe   : > { %1085 = vmatpush3.bf16.msra.mxu0 %v1082_v5 }
  0xbf   : > { %1087 = vmatprep.subr.bf16.mxu0 %v1086_v8 }
  0xc2   : > { %1089 = vmatpush3.bf16.msra.mxu0 %v1086_v8 }
  0xc3   : > { %1091 = vmatprep.subr.bf16.mxu0 %v1090_v24 }
  0xc6   : > { %1093 = vmatpush3.bf16.msra.mxu0 %v1090_v24 }
 0x17b   : > { %v918_v10 = vpop.f32.mrb[0].mxu0 }
 0x17c   : > { %v442_v11 = vadd.f32 %v918_v10, %v814_v9  ;;  %v436_v12 = vpop.f32.mrb[1].mxu0 }
 0x17d   : > { %v437_v13 = vadd.f32 %v814_v9, %v436_v12 }
 0x17e   : > { %v456_v16 = vmax.f32 %v442_v11, 0.0 }
 0x17f   : > { %v921_v14 = vpop.f32.mrb[2].mxu0  ;;  %v455_v15 = vmax.f32 %v437_v13, 0.0 }
 0x180   : > { %v452_v17 = vadd.f32 %v921_v14, %v814_v9  ;;  %v446_v18 = vpop.f32.mrb[3].mxu0 }
 0x181   : > { %v447_v19 = vadd.f32 %v814_v9, %v446_v18  ;;  %954 = vmatprep.mubr.f32.mxu1 %v455_v15 }
 0x182   : > { %955 = vmatmul.mubr.f32.vlgmr.msra.gmra.mrb[0].mxu1 %v456_v16  ;;  %v458_v21 = vmax.f32 %v452_v17, 0.0 }
 0x183   : > { %v457_v20 = vmax.f32 %v447_v19, 0.0  ;;  %1102 = vmatpush3.bf16.msra.mxu1 %v1062_v55 }
 0x184   : > { %1095 = vmatprep.subr.bf16.mxu1 %v1066_v57 }
 0x185   : > { %957 = vmatprep.mubr.f32.mxu1 %v457_v20 }
 0x186   : > { %958 = vmatmul.mubr.f32.gmra.mrb[2].mxu1 %v458_v21 }
 0x187   : > { %1103 = vmatpush3.bf16.msra.mxu1 %v1066_v57 }
 0x188   : > { %1096 = vmatprep.subr.bf16.mxu1 %v1070_v60 }
 0x18b   : > { %1104 = vmatpush3.bf16.msra.mxu1 %v1070_v60 }
 0x18c   : > { %1097 = vmatprep.subr.bf16.mxu1 %v1074_v63 }
 0x18f   : > { %1105 = vmatpush3.bf16.msra.mxu1 %v1074_v63 }
 0x190   : > { %1098 = vmatprep.subr.bf16.mxu1 %v1078_v2 }
 0x193   : > { %1106 = vmatpush3.bf16.msra.mxu1 %v1078_v2 }
 0x194   : > { %1099 = vmatprep.subr.bf16.mxu1 %v1082_v5 }
 0x197   : > { %1107 = vmatpush3.bf16.msra.mxu1 %v1082_v5 }
 0x198   : > { %1100 = vmatprep.subr.bf16.mxu1 %v1086_v8 }
 0x19b   : > { %1108 = vmatpush3.bf16.msra.mxu1 %v1086_v8 }
 0x19c   : > { %1101 = vmatprep.subr.bf16.mxu1 %v1090_v24 }
 0x19f   : > { %1109 = vmatpush3.bf16.msra.mxu1 %v1090_v24 }
 0x255   : > { %v956_v26 = vpop.f32.mrb[0].mxu1 }
 0x256   : > { %v554_v27 = vadd.f32 %v956_v26, %v815_v25  ;;  %v548_v28 = vpop.f32.mrb[1].mxu1 }
 0x257   : > { %v549_v29 = vadd.f32 %v815_v25, %v548_v28 }
 0x258   : > { %v568_v32 = vmax.f32 %v554_v27, 0.0 }
 0x259   : > { %v567_v30 = vmax.f32 %v549_v29, 0.0  ;;  %v959_v31 = vpop.f32.mrb[2].mxu1 }
 0x25a   : > { %v564_v33 = vadd.f32 %v959_v31, %v815_v25  ;;  %v558_v34 = vpop.f32.mrb[3].mxu1 }
 0x25b   : > { %v559_v35 = vadd.f32 %v815_v25, %v558_v34  ;;  %992 = vmatprep.mubr.f32.mxu0 %v567_v30 }
 0x25c   : > { %993 = vmatmul.mubr.f32.vlgmr.msra.gmra.mrb[4].mxu0 %v568_v32  ;;  %v570_v37 = vmax.f32 %v564_v33, 0.0 }
 0x25d   : > { %v569_v36 = vmax.f32 %v559_v35, 0.0 }
 0x25f   : > { %995 = vmatprep.mubr.f32.mxu1 %v569_v36 }
 0x260   : > { %996 = vmatmul.mubr.f32.vlgmr.msra.gmra.mrb[4].mxu1 %v570_v37 }
 0x32f   : > { %v994_v39 = vpop.f32.mrb[4].mxu0 }
 0x330   : > { %v666_v40 = vadd.f32 %v994_v39, %v816_v38  ;;  %v660_v41 = vpop.f32.mrb[5].mxu0 }
 0x331   : > { %v661_v42 = vadd.f32 %v816_v38, %v660_v41 }
 0x332   : > { %680 = vst [vmem:[%s340_s12 + $0x8] sm:$0xff] %v666_v40 }
 0x333   : > { %679 = vst [vmem:[%s340_s12] sm:$0xff] %v661_v42  ;;  %v997_v43 = vpop.f32.mrb[4].mxu1 }
 0x334   : > { %v676_v44 = vadd.f32 %v997_v43, %v816_v38  ;;  %v670_v45 = vpop.f32.mrb[5].mxu1 }
 0x335   : > { %v671_v46 = vadd.f32 %v816_v38, %v670_v45 }
 0x336   : > { %682 = vst [vmem:[%s340_s12 + $0x18] sm:$0xff] %v676_v44 }
 0x337   : > { %681 = vst [vmem:[%s340_s12 + $0x10] sm:$0xff] %v671_v46 }
 0x338   : > { %1318 = shalt.err (!%p1315_p4)
}
 0x339   : > { %s1319_s13 = scalar_lea.hbm %s1676_s11, 512  ;;  %s1323_s14 = scalar_lea.hbm %s1727_s7, 1024 }
 0x33a   : > { %p1320_p9 = scmp.ne.s32.totalorder %s1676_s11, %s1319_s13  ;;  %p1324_p8 = scmp.lt.u32.totalorder %s1676_s11, %s1727_s7 }
 0x33b   : > { %p1325_p13 = scmp.lt.u32.totalorder %s1323_s14, %s1319_s13  ;;  %p1327_p10 = scmp.lt.u32.totalorder %s1319_s13, %s1676_s11 }
 0x33c   : > { %p1321_p0 = pnand %p1320_p9, %p1584_p5 }
 0x33d   : > { %p1326_p6 = por %p1325_p13, %p1324_p8 }
 0x33e   : > { %p1322_p11 = pneg %p1321_p0 }
 0x33f   : > { %p1328_p3 = por %p1327_p10, %p1326_p6 }
 0x341   : > { %p1329_p7 = pnand %p1328_p3, %p1322_p11 }
 0x343   : > { %1332 = shalt.err (!%p1329_p7)
}
 0x344   : > { %s1388_s16 = smov 128   ;;  %s1389_s29 = smov 8  }
 0x345   : > { %1124 = dma.vmem_to_hbm [thread:$0]  (%p1584_p5), %s1671_s20, 512, %s1676_s11, %s684_s23, %s1388_s16, %s1388_s16, %s1389_s29  }
 0x346 PF: > { %s1747_s28 = sld [smem:[#allocation15_spill]]  ;;  %s712_s8 = sand.u32 1, %s1367_s24  }
 0x347   : > { %p1749_p1 = scmp.ge.s32.totalorder %s1379_s27, 2  ;;  %s713_s30 = scalar_lea.sflag [#allocation4], %s712_s8 }
 0x34c   : > { %p1748_p12 = scmp.ne.s32.totalorder %s1747_s28, 0 }
 0x34e   : > { %p1141_p2 = pnand %p1749_p1, %p1748_p12 }
 0x350   : > { %1362 = dma.done.wait (!%p1141_p2), %s713_s30, 512  }
 0x351   : > { %1364 = vsyncadd (!%p1141_p2), %s713_s30, 4294966784  ;;  %p22_p4 = scmp.ge.s32.totalorder %s1570_s22, 4   ;;  %s1750_s24 = smov %s1371_s25 }
 0x352   : > { %s1751_s25 = smov %s1375_s26  ;;  %s1752_s26 = smov %s1580_s18 }
 0x353   : > { %s1753_s27 = smov %s1570_s22  ;;  %24 = sbr.rel (!%p22_p4) target bundleno = 7 (0x7), region = 105 }
 0x35a   :  { %718 = vsyncpa [#allocation3], 1 }
 0x35b   :  { %720 = vsyncpa [#allocation3 + $0x1], 1 }
 0x35c   :  { %721 = vsyncpa [#allocation6], 1 }
 0x35d   :  { %722 = vsyncpa [#allocation9], 1 }
 0x35e   :  { %723 = vsyncpa [#allocation4], 1 }
 0x35f   :  { %725 = vsyncpa [#allocation4 + $0x1], 1 }

</bundles_post_ra>
